<compile_context>
chip_gen: v7x
topology: tpu7x:2x2x1
jax: 0.10.0
libtpu: 0.0.40
codegen_flags: <defaults>
</compile_context>

<pallas_src>
import jax
import jax.numpy as jnp
from jax.experimental import pallas as pl
from jax.experimental.pallas import tpu as pltpu


# ----------------------------------------------------------------------------- kernel


def fused_gnn_sage_kernel(anorm_ref, h_ref, w1_ref, b1_ref, w2_ref, b2_ref, out_ref):
    """Fused 2-layer GraphSAGE forward. All operands resident in VMEM.

    anorm_ref : (N, N)        bf16   row-normalized adjacency
    h_ref     : (N, Fp)       bf16   input node features (feature dim padded to 128)
    w1_ref    : (2*Fp, Hp)    bf16   [W_self_1 ; W_neigh_1]   (row-concat)
    b1_ref    : (1, Hp)       f32
    w2_ref    : (Hp, 2*Cp)    bf16   [W_self_2 | W_neigh_2]   (col-concat)
    b2_ref    : (1, Cp)       f32
    out_ref   : (N, Cp)       f32    class logits (padded; sliced in wrapper)
    """
    a = anorm_ref[...]                                   # loaded once, reused by both layers
    h = h_ref[...]

    # ---------------- layer 1: SAGEConv(mean) + relu ----------------
    # neighbor mean aggregation on the MXU, f32 accumulate
    neigh = jnp.dot(a, h, preferred_element_type=jnp.float32)            # (N, Fp) f32
    # fused self/neighbor transform: [H | A@H] @ [W_self_1; W_neigh_1]
    hn = jnp.concatenate([h, neigh.astype(h.dtype)], axis=-1)            # (N, 2Fp) bf16
    z1 = jnp.dot(hn, w1_ref[...], preferred_element_type=jnp.float32)    # (N, Hp)  f32
    h1 = jnp.maximum(z1 + b1_ref[...], 0.0)                              # relu
    # dropout between layers: identity in eval mode
    h1 = h1.astype(h.dtype)                                              # (N, Hp) bf16

    # ---------------- layer 2: SAGEConv(mean), no activation ----------------
    # fused self/neighbor transform first (single K=Hp matmul), then the aggregation
    # reassociated as A @ (H1 @ W_neigh_2) so the N×N matmul contracts over Cp.
    cp = out_ref.shape[-1]
    z2 = jnp.dot(h1, w2_ref[...], preferred_element_type=jnp.float32)    # (N, 2Cp) f32
    self2 = z2[:, :cp]                                                   # H1 @ W_self_2
    hn2 = z2[:, cp:].astype(h.dtype)                                     # H1 @ W_neigh_2 (bf16)
    neigh2 = jnp.dot(a, hn2, preferred_element_type=jnp.float32)         # (N, Cp) f32

    out_ref[...] = (self2 + neigh2 + b2_ref[...]).astype(out_ref.dtype)


# ----------------------------------------------------------------------------- wrapper


def _round_up(x, m=128):
    return ((x + m - 1) // m) * m


def _pad2d(x, rows, cols):
    return jnp.pad(x, ((0, rows - x.shape[0]), (0, cols - x.shape[1])))


def gnn_sage_forward(anorm, features, params, *, compute_dtype=jnp.bfloat16):
    """Full GNNSage forward: SAGEConv(relu) -> dropout(identity, eval) -> SAGEConv."""
    n = anorm.shape[0]
    f_in = features.shape[1]
    hidden = params["w_self_1"].shape[1]
    n_classes = params["w_self_2"].shape[1]

    fp = _round_up(f_in)        # padded input-feature dim  (lane-dense)
    hp = _round_up(hidden)      # padded hidden dim
    cp = _round_up(n_classes)   # padded output dim (lane-dense stores)

    cd = compute_dtype
    a = anorm.astype(cd)
    h = _pad2d(features, n, fp).astype(cd)

    # fuse self/neighbor weights in the wrapper (no in-kernel weight concat)
    w1 = jnp.concatenate(
        [_pad2d(params["w_self_1"], fp, hp), _pad2d(params["w_neigh_1"], fp, hp)],
        axis=0).astype(cd)                                               # (2*fp, hp)
    b1 = _pad2d(params["b_1"].reshape(1, -1), 1, hp).astype(jnp.float32)

    w2 = jnp.concatenate(
        [_pad2d(params["w_self_2"], hp, cp), _pad2d(params["w_neigh_2"], hp, cp)],
        axis=1).astype(cd)                                               # (hp, 2*cp)
    b2 = _pad2d(params["b_2"].reshape(1, -1), 1, cp).astype(jnp.float32)

    out_padded = pl.pallas_call(
        fused_gnn_sage_kernel,
        out_shape=jax.ShapeDtypeStruct((n, cp), jnp.float32),
        grid=(1,),
        in_specs=[
            pl.BlockSpec((n, n),        lambda i: (0, 0)),   # A_norm (resident once)
            pl.BlockSpec((n, fp),       lambda i: (0, 0)),   # features
            pl.BlockSpec((2 * fp, hp),  lambda i: (0, 0)),   # fused layer-1 weights
            pl.BlockSpec((1, hp),       lambda i: (0, 0)),   # bias 1
            pl.BlockSpec((hp, 2 * cp),  lambda i: (0, 0)),   # fused layer-2 weights
            pl.BlockSpec((1, cp),       lambda i: (0, 0)),   # bias 2
        ],
        out_specs=pl.BlockSpec((n, cp), lambda i: (0, 0)),
        compiler_params=pltpu.CompilerParams(
            dimension_semantics=("arbitrary",)),
    )(a, h, w1, b1, w2, b2)

    return out_padded[:, :n_classes]


# ----------------------------------------------------------------------------- setup / demo


def make_params(key, in_feats, hidden_size, num_classes):
    """Deterministic Xavier-uniform-ish init, mirroring SAGEConv parameter shapes."""
    ks = jax.random.split(key, 4)

    def xavier(k, fan_in, fan_out):
        lim = jnp.sqrt(6.0 / (fan_in + fan_out))
        return jax.random.uniform(k, (fan_in, fan_out), jnp.float32, -lim, lim)

    return {
        "w_self_1":  xavier(ks[0], in_feats, hidden_size),
        "w_neigh_1": xavier(ks[1], in_feats, hidden_size),
        "b_1":       jnp.zeros((hidden_size,), jnp.float32),
        "w_self_2":  xavier(ks[2], hidden_size, num_classes),
        "w_neigh_2": xavier(ks[3], hidden_size, num_classes),
        "b_2":       jnp.zeros((num_classes,), jnp.float32),
    }


def make_graph(key, n_nodes, edge_prob=0.15):
    """Random undirected graph with self-loops -> row-normalized (mean) adjacency."""
    a = (jax.random.uniform(key, (n_nodes, n_nodes)) < edge_prob).astype(jnp.float32)
    a = jnp.maximum(a, a.T)                                           # symmetrize
    a = a.at[jnp.arange(n_nodes), jnp.arange(n_nodes)].set(1.0)       # self-loops
    deg = jnp.maximum(a.sum(axis=1, keepdims=True), 1.0)
    return a / deg                                                    # row-normalized -> mean


def ref_forward(anorm, feats, params, compute_dtype=jnp.bfloat16):
    """Pure-JAX reference mirroring the kernel's bf16-input / f32-accumulate math."""
    cd = compute_dtype
    a = anorm.astype(cd)
    h = feats.astype(cd)
    neigh = jnp.dot(a, h, preferred_element_type=jnp.float32).astype(cd)
    z1 = (jnp.dot(h, params["w_self_1"].astype(cd), preferred_element_type=jnp.float32)
          + jnp.dot(neigh, params["w_neigh_1"].astype(cd), preferred_element_type=jnp.float32)
          + params["b_1"])
    h1 = jnp.maximum(z1, 0.0).astype(cd)
    self2 = jnp.dot(h1, params["w_self_2"].astype(cd), preferred_element_type=jnp.float32)
    hn2 = jnp.dot(h1, params["w_neigh_2"].astype(cd),
                  preferred_element_type=jnp.float32).astype(cd)
    neigh2 = jnp.dot(a, hn2, preferred_element_type=jnp.float32)
    return self2 + neigh2 + params["b_2"]


if __name__ == "__main__":
    N = 128            # number of graph nodes (small demo, lane-aligned)
    IN_FEATS = 16
    HIDDEN = 32
    NUM_CLASSES = 8

    root = jax.random.PRNGKey(0)
    k_graph, k_feat, k_param = jax.random.split(root, 3)

    anorm = make_graph(k_graph, N)
    features = jax.random.normal(k_feat, (N, IN_FEATS), jnp.float32)
    params = make_params(k_param, IN_FEATS, HIDDEN, NUM_CLASSES)

    logits = gnn_sage_forward(anorm, features, params)
    jax.block_until_ready(logits)

    ref = ref_forward(anorm, features, params)
    assert logits.shape == (N, NUM_CLASSES)
    assert jnp.allclose(logits, ref, atol=2e-3, rtol=2e-3), (
        float(jnp.max(jnp.abs(logits - ref))))

    print("KERNEL_OK")
</pallas_src>

<mosaic_0001>
module attributes {stable_mosaic.version = 11 : i64} {
  func.func @fused_gnn_sage_kernel(%arg0: i32, %arg1: memref<128x128xbf16, #tpu.memory_space<vmem>>, %arg2: memref<128x128xbf16, #tpu.memory_space<vmem>>, %arg3: memref<256x128xbf16, #tpu.memory_space<vmem>>, %arg4: memref<1x128xf32, #tpu.memory_space<vmem>>, %arg5: memref<128x256xbf16, #tpu.memory_space<vmem>>, %arg6: memref<1x128xf32, #tpu.memory_space<vmem>>, %arg7: memref<128x128xf32, #tpu.memory_space<vmem>>) attributes {dimension_semantics = [#tpu.dimension_semantics<arbitrary>], iteration_bounds = array<i64: 1>, scalar_prefetch = 0 : i64, scratch_operands = 0 : i64, tpu.core_type = #tpu.core_type<tc>, window_params = [{pipeline_mode = #tpu.pipeline_mode<synchronous>, transform_indices = @transform_0, window_bounds = array<i64: 128, 128>}, {pipeline_mode = #tpu.pipeline_mode<synchronous>, transform_indices = @transform_1, window_bounds = array<i64: 128, 128>}, {pipeline_mode = #tpu.pipeline_mode<synchronous>, transform_indices = @transform_2, window_bounds = array<i64: 256, 128>}, {pipeline_mode = #tpu.pipeline_mode<synchronous>, transform_indices = @transform_3, window_bounds = array<i64: 1, 128>}, {pipeline_mode = #tpu.pipeline_mode<synchronous>, transform_indices = @transform_4, window_bounds = array<i64: 128, 256>}, {pipeline_mode = #tpu.pipeline_mode<synchronous>, transform_indices = @transform_5, window_bounds = array<i64: 1, 128>}, {pipeline_mode = #tpu.pipeline_mode<synchronous>, transform_indices = @transform_6, window_bounds = array<i64: 128, 128>}]} {
    %c0 = arith.constant 0 : index
    %c0_0 = arith.constant 0 : index
    %0 = vector.load %arg1[%c0, %c0_0] : memref<128x128xbf16, #tpu.memory_space<vmem>>, vector<128x128xbf16>
    %c0_1 = arith.constant 0 : index
    %c0_2 = arith.constant 0 : index
    %1 = vector.load %arg2[%c0_1, %c0_2] : memref<128x128xbf16, #tpu.memory_space<vmem>>, vector<128x128xbf16>
    %cst = arith.constant dense<0.000000e+00> : vector<128x128xf32>
    %2 = tpu.matmul %0, %1, %cst {dimension_numbers = #tpu.dot_dimension_numbers<[1], [0], [0], [1], [0, 0, 1, 1], [], []>} : vector<128x128xbf16>, vector<128x128xbf16>, vector<128x128xf32> -> vector<128x128xf32>
    %3 = arith.truncf %2 : vector<128x128xf32> to vector<128x128xbf16>
    %4 = tpu.concatenate %1, %3 in 1 : vector<128x128xbf16>, vector<128x128xbf16> -> vector<128x256xbf16>
    %c0_3 = arith.constant 0 : index
    %c0_4 = arith.constant 0 : index
    %5 = vector.load %arg3[%c0_3, %c0_4] : memref<256x128xbf16, #tpu.memory_space<vmem>>, vector<256x128xbf16>
    %cst_5 = arith.constant dense<0.000000e+00> : vector<128x128xf32>
    %6 = tpu.matmul %4, %5, %cst_5 {dimension_numbers = #tpu.dot_dimension_numbers<[1], [0], [0], [1], [0, 0, 1, 1], [], []>} : vector<128x256xbf16>, vector<256x128xbf16>, vector<128x128xf32> -> vector<128x128xf32>
    %c0_6 = arith.constant 0 : index
    %c0_7 = arith.constant 0 : index
    %7 = vector.load %arg4[%c0_6, %c0_7] : memref<1x128xf32, #tpu.memory_space<vmem>>, vector<1x128xf32>
    %8 = vector.broadcast %7 : vector<1x128xf32> to vector<128x128xf32>
    %9 = arith.addf %6, %8 : vector<128x128xf32>
    %cst_8 = arith.constant 0.000000e+00 : f32
    %10 = vector.broadcast %cst_8 : f32 to vector<128x128xf32>
    %11 = arith.maximumf %9, %10 : vector<128x128xf32>
    %12 = arith.truncf %11 : vector<128x128xf32> to vector<128x128xbf16>
    %c0_9 = arith.constant 0 : index
    %c0_10 = arith.constant 0 : index
    %13 = vector.load %arg5[%c0_9, %c0_10] : memref<128x256xbf16, #tpu.memory_space<vmem>>, vector<128x256xbf16>
    %cst_11 = arith.constant dense<0.000000e+00> : vector<128x256xf32>
    %14 = tpu.matmul %12, %13, %cst_11 {dimension_numbers = #tpu.dot_dimension_numbers<[1], [0], [0], [1], [0, 0, 1, 1], [], []>} : vector<128x128xbf16>, vector<128x256xbf16>, vector<128x256xf32> -> vector<128x256xf32>
    %15 = vector.extract_strided_slice %14 {offsets = [0, 0], sizes = [128, 128], strides = [1, 1]} : vector<128x256xf32> to vector<128x128xf32>
    %16 = vector.extract_strided_slice %14 {offsets = [0, 128], sizes = [128, 128], strides = [1, 1]} : vector<128x256xf32> to vector<128x128xf32>
    %17 = arith.truncf %16 : vector<128x128xf32> to vector<128x128xbf16>
    %cst_12 = arith.constant dense<0.000000e+00> : vector<128x128xf32>
    %18 = tpu.matmul %0, %17, %cst_12 {dimension_numbers = #tpu.dot_dimension_numbers<[1], [0], [0], [1], [0, 0, 1, 1], [], []>} : vector<128x128xbf16>, vector<128x128xbf16>, vector<128x128xf32> -> vector<128x128xf32>
    %19 = arith.addf %15, %18 : vector<128x128xf32>
    %c0_13 = arith.constant 0 : index
    %c0_14 = arith.constant 0 : index
    %20 = vector.load %arg6[%c0_13, %c0_14] : memref<1x128xf32, #tpu.memory_space<vmem>>, vector<1x128xf32>
    %21 = vector.broadcast %20 : vector<1x128xf32> to vector<128x128xf32>
    %22 = arith.addf %19, %21 : vector<128x128xf32>
    %c0_15 = arith.constant 0 : index
    %c0_16 = arith.constant 0 : index
    %23 = vector.load %arg7[%c0_15, %c0_16] : memref<128x128xf32, #tpu.memory_space<vmem>>, vector<128x128xf32>
    tpu.vector_store %arg7[%c0_15, %c0_16], %22 {strides = array<i32>} : memref<128x128xf32, #tpu.memory_space<vmem>>, vector<128x128xf32>,
    return
  }
  func.func @transform_0(%arg0: i32) -> (i32, i32) {
    %c0_i32 = arith.constant 0 : i32
    %c0_i32_0 = arith.constant 0 : i32
    %c0_i32_1 = arith.constant 0 : i32
    return %c0_i32, %c0_i32_0 : i32, i32
  }
  func.func @transform_1(%arg0: i32) -> (i32, i32) {
    %c0_i32 = arith.constant 0 : i32
    %c0_i32_0 = arith.constant 0 : i32
    %c0_i32_1 = arith.constant 0 : i32
    return %c0_i32, %c0_i32_0 : i32, i32
  }
  func.func @transform_2(%arg0: i32) -> (i32, i32) {
    %c0_i32 = arith.constant 0 : i32
    %c0_i32_0 = arith.constant 0 : i32
    %c0_i32_1 = arith.constant 0 : i32
    return %c0_i32, %c0_i32_0 : i32, i32
  }
  func.func @transform_3(%arg0: i32) -> (i32, i32) {
    %c0_i32 = arith.constant 0 : i32
    %c0_i32_0 = arith.constant 0 : i32
    %c0_i32_1 = arith.constant 0 : i32
    return %c0_i32, %c0_i32_0 : i32, i32
  }
  func.func @transform_4(%arg0: i32) -> (i32, i32) {
    %c0_i32 = arith.constant 0 : i32
    %c0_i32_0 = arith.constant 0 : i32
    %c0_i32_1 = arith.constant 0 : i32
    return %c0_i32, %c0_i32_0 : i32, i32
  }
  func.func @transform_5(%arg0: i32) -> (i32, i32) {
    %c0_i32 = arith.constant 0 : i32
    %c0_i32_0 = arith.constant 0 : i32
    %c0_i32_1 = arith.constant 0 : i32
    return %c0_i32, %c0_i32_0 : i32, i32
  }
  func.func @transform_6(%arg0: i32) -> (i32, i32) {
    %c0_i32 = arith.constant 0 : i32
    %c0_i32_0 = arith.constant 0 : i32
    %c0_i32_1 = arith.constant 0 : i32
    return %c0_i32, %c0_i32_0 : i32, i32
  }
}

</mosaic_0001>

<bundles_post_ra>
// kernel: tpu_custom_call.1
= control target key start
LH: loop header
LB: loop body
LE: loop exit
PB: predicated region body
PF: predicated region fallthrough
CT: control target
= control target key end

     0   :  { %11 = vsyncpa [#allocation3], 0  ;;  %s1643_s0 = inlined_call_operand.hbm [shape: bf16[128,128], index: 0, kind: input, shape index: {}]   ;;  %s1644_s1 = inlined_call_operand.hbm [shape: bf16[128,128], index: 1, kind: input, shape index: {}]   ;;  %s1645_s2 = inlined_call_operand.hbm [shape: bf16[256,128], index: 2, kind: input, shape index: {}]   ;;  %s1646_s3 = inlined_call_operand.vmem [shape: f32[1,128], index: 3, kind: input, shape index: {}]   ;;  %s1647_s4 = inlined_call_operand.hbm [shape: bf16[128,256], index: 4, kind: input, shape index: {}]   ;;  %s1648_s5 = inlined_call_operand.vmem [shape: f32[1,128], index: 5, kind: input, shape index: {}]   ;;  %s1649_s6 = inlined_call_operand.hbm [shape: f32[128,128], index: 6, kind: output, shape index: {}]  }
   0x1   :  { %12 = vsyncpa [#allocation6], 0 }
   0x2   :  { %13 = vsyncpa [#allocation9], 0 }
   0x3   :  { %14 = vsyncpa [#allocation4], 0  ;;  %s1351_s21 = smov [#allocation5]   ;;  %s1352_s23 = smov [#allocation2]  }
   0x4   :  { %s32_s22 = sshll.u32 %s1351_s21, 4  ;;  %s20_s24 = sshll.u32 %s1352_s23, 4  ;;  %s33_s22 = int_to_ptr.vmem [resolvable:$true] %s32_s22  ;;  %s1396_s24 = int_to_ptr.vmem [resolvable:$true] %s20_s24 }
   0x5   :  { %s1233_s27 = scalar_lea.hbm %s1644_s1, 1024 }
   0x6   :  { %p1234_p0 = scmp.ne.s32.totalorder %s1644_s1, %s1233_s27  ;;  %p1237_p1 = scmp.lt.u32.totalorder %s1233_s27, %s1644_s1 }
   0x8   :  { %p1239_p2 = pnand %p1237_p1, %p1234_p0 }
   0xa   :  { %1242 = shalt.err (!%p1239_p2)
}
   0xb   :  { %s1243_s8 = scalar_lea.vmem %s33_s22, 1024  ;;  %p1248_p4 = scmp.lt.s32.totalorder %s33_s22, %s33_s22 }
   0xc   :  { %p1244_p3 = scmp.ne.s32.totalorder %s33_s22, %s1243_s8  ;;  %p1249_p5 = scmp.lt.s32.totalorder %s1243_s8, %s1243_s8 }
   0xe   :  { %p1250_p6 = por %p1249_p5, %p1248_p4 }
  0x10   :  { %p1251_p7 = pnand %p1250_p6, %p1244_p3 }
  0x12   :  { %1254 = shalt.err (!%p1251_p7)
}
  0x13   :  { %s1353_s9 = smov 64   ;;  %s1354_s10 = smov 4  }
  0x14   :  { %38 = dma.hbm_to_vmem [thread:$0]  %s1644_s1, 1024, %s33_s22, [#allocation6], %s1353_s9, %s1353_s9, %s1354_s10  }
  0x15   :  { %s1255_s15 = scalar_lea.hbm %s1643_s0, 1024 }
  0x16   :  { %p1256_p8 = scmp.ne.s32.totalorder %s1643_s0, %s1255_s15  ;;  %p1259_p9 = scmp.lt.u32.totalorder %s1255_s15, %s1643_s0 }
  0x18   :  { %p1261_p10 = pnand %p1259_p9, %p1256_p8 }
  0x1a   :  { %1264 = shalt.err (!%p1261_p10)
}
  0x1b   :  { %s1265_s20 = scalar_lea.vmem %s1396_s24, 1024  ;;  %p1270_p12 = scmp.lt.s32.totalorder %s1396_s24, %s1396_s24 }
  0x1c   :  { %p1266_p11 = scmp.ne.s32.totalorder %s1396_s24, %s1265_s20  ;;  %p1271_p13 = scmp.lt.s32.totalorder %s1265_s20, %s1265_s20 }
  0x1e   :  { %p1272_p0 = por %p1271_p13, %p1270_p12 }
  0x20   :  { %p1273_p1 = pnand %p1272_p0, %p1266_p11 }
  0x22   :  { %1276 = shalt.err (!%p1273_p1)
}
  0x23   :  { %26 = dma.hbm_to_vmem [thread:$0]  %s1643_s0, 1024, %s1396_s24, [#allocation3], %s1353_s9, %s1353_s9, %s1354_s10  }
  0x24   :  { %s1355_s22 = smov [#allocation7]   ;;  %s1356_s25 = smov [#allocation8]  }
  0x25   :  { %s44_s23 = sshll.u32 %s1355_s22, 4  ;;  %s58_s26 = sshll.u32 %s1356_s25, 4  ;;  %s45_s23 = int_to_ptr.vmem [resolvable:$true] %s44_s23  ;;  %s1433_s26 = int_to_ptr.vmem [resolvable:$true] %s58_s26 }
  0x26   :  { %s1277_s29 = scalar_lea.hbm %s1645_s2, 2048 }
  0x27   :  { %p1278_p2 = scmp.ne.s32.totalorder %s1645_s2, %s1277_s29  ;;  %p1281_p3 = scmp.lt.u32.totalorder %s1277_s29, %s1645_s2 }
  0x29   :  { %p1283_p4 = pnand %p1281_p3, %p1278_p2 }
  0x2b   :  { %1286 = shalt.err (!%p1283_p4)
}
  0x2c   :  { %s1287_s0 = scalar_lea.vmem %s45_s23, 2048  ;;  %p1292_p6 = scmp.lt.s32.totalorder %s45_s23, %s45_s23 }
  0x2d   :  { %p1288_p5 = scmp.ne.s32.totalorder %s45_s23, %s1287_s0  ;;  %p1293_p7 = scmp.lt.s32.totalorder %s1287_s0, %s1287_s0 }
  0x2f   :  { %p1294_p8 = por %p1293_p7, %p1292_p6 }
  0x31   :  { %p1295_p9 = pnand %p1294_p8, %p1288_p5 }
  0x33   :  { %1298 = shalt.err (!%p1295_p9)
}
  0x34   :  { %50 = dma.hbm_to_vmem [thread:$0]  %s1645_s2, 2048, %s45_s23, [#allocation6], %s1353_s9, %s1353_s9, %s1354_s10  }
  0x35   :  { %s1299_s15 = scalar_lea.hbm %s1647_s4, 2048 }
  0x36   :  { %p1300_p10 = scmp.ne.s32.totalorder %s1647_s4, %s1299_s15  ;;  %p1303_p11 = scmp.lt.u32.totalorder %s1299_s15, %s1647_s4 }
  0x38   :  { %p1305_p12 = pnand %p1303_p11, %p1300_p10 }
  0x3a   :  { %1308 = shalt.err (!%p1305_p12)
}
  0x3b   :  { %s1309_s20 = scalar_lea.vmem %s1433_s26, 2048  ;;  %p1314_p0 = scmp.lt.s32.totalorder %s1433_s26, %s1433_s26 }
  0x3c   :  { %p1310_p13 = scmp.ne.s32.totalorder %s1433_s26, %s1309_s20  ;;  %p1315_p1 = scmp.lt.s32.totalorder %s1309_s20, %s1309_s20 }
  0x3e   :  { %p1316_p2 = por %p1315_p1, %p1314_p0 }
  0x40   :  { %p1317_p3 = pnand %p1316_p2, %p1310_p13 }
  0x42   :  { %1320 = shalt.err (!%p1317_p3)
}
  0x43   :  { %s1357_s2 = smov 128   ;;  %s1358_s9 = smov 8  }
  0x44   :  { %64 = dma.hbm_to_vmem [thread:$0]  %s1647_s4, 2048, %s1433_s26, [#allocation9], %s1357_s2, %s1357_s2, %s1358_s9  }
  0x45   :  { %1343 = dma.done.wait [#allocation3], 1024  }
  0x46   :  { %1344 = vsyncadd [#allocation3], 4294966272 }
  0x47   :  { %1345 = dma.done.wait [#allocation6], 3072  }
  0x48   :  { %1346 = vsyncadd [#allocation6], 4294964224 }
  0x49   :  { %1347 = dma.done.wait [#allocation9], 2048  }
  0x4a   :  { %1348 = vsyncadd [#allocation9], 4294965248  ;;  %v1470_v0 = vld [vmem:[#allocation5] sm:$0xff]   ;;  %v1472_v1 = vld [vmem:[#allocation5 + $0x8] sm:$0xff]  }
  0x4b   :  { %1103 = vmatprep.subr.bf16.mxu0 %v1470_v0  ;;  %v1477_v2 = vld [vmem:[#allocation5 + $0x10] sm:$0xff]   ;;  %v1480_v3 = vld [vmem:[#allocation5 + $0x18] sm:$0xff]   ;;  %v1483_v4 = vld [vmem:[#allocation2] sm:$0xff]  }
  0x4c   :  { %1104 = vmatpush3.bf16.msra.mxu0 %v1470_v0  ;;  %1119 = vmatprep.mubr.bf16.mxu0 %v1483_v4  ;;  %v1488_v5 = vld [vmem:[#allocation5 + $0x20] sm:$0xff]   ;;  %v1491_v6 = vld [vmem:[#allocation5 + $0x28] sm:$0xff]   ;;  %v1494_v9 = vld [vmem:[#allocation5 + $0x30] sm:$0xff]  }
  0x4d   :  { %1105 = vmatprep.subr.bf16.mxu0 %v1472_v1  ;;  %v1193_v7 = vld [vmem:[#allocation7 + $0x40] sm:$0xff]   ;;  %v1195_v10 = vld [vmem:[#allocation7 + $0x48] sm:$0xff]   ;;  %v1197_v12 = vld [vmem:[#allocation7 + $0x50] sm:$0xff]  }
  0x4e   :  { %v1194_v8 = vld [vmem:[#allocation7] sm:$0xff]   ;;  %1023 = vmatprep.subr.bf16.mxu1 %v1193_v7  ;;  %v1196_v11 = vld [vmem:[#allocation7 + $0x8] sm:$0xff]   ;;  %v1498_v13 = vld [vmem:[#allocation5 + $0x38] sm:$0xff]  }
  0x4f   :  { %1024 = vmatpush3.bf16.msra.mxu1 %v1194_v8  ;;  %v1198_v14 = vld [vmem:[#allocation7 + $0x10] sm:$0xff]   ;;  %v1199_v15 = vld [vmem:[#allocation7 + $0x58] sm:$0xff]   ;;  %v1504_v17 = vld [vmem:[#allocation2 + $0x8] sm:$0xff]  }
  0x50   :  { %1106 = vmatpush3.bf16.msra.mxu0 %v1472_v1  ;;  %1025 = vmatprep.subr.bf16.mxu1 %v1195_v10  ;;  %v1200_v16 = vld [vmem:[#allocation7 + $0x18] sm:$0xff]   ;;  %v1201_v18 = vld [vmem:[#allocation7 + $0x60] sm:$0xff]   ;;  %v1506_v19 = vld [vmem:[#allocation2 + $0x10] sm:$0xff]  }
  0x51   :  { %1107 = vmatprep.subr.bf16.mxu0 %v1477_v2  ;;  %v1202_v20 = vld [vmem:[#allocation7 + $0x20] sm:$0xff]   ;;  %v1203_v21 = vld [vmem:[#allocation7 + $0x68] sm:$0xff]   ;;  %v1205_v23 = vld [vmem:[#allocation7 + $0x70] sm:$0xff]  }
  0x52   :  { %v1204_v22 = vld [vmem:[#allocation7 + $0x28] sm:$0xff]   ;;  %v1511_v24 = vld [vmem:[#allocation2 + $0x18] sm:$0xff]   ;;  %v1513_v25 = vld [vmem:[#allocation2 + $0x20] sm:$0xff]  }
  0x53   :  { %1026 = vmatpush3.bf16.msra.mxu1 %v1196_v11  ;;  %v1517_v26 = vld [vmem:[#allocation2 + $0x28] sm:$0xff]   ;;  %v1519_v27 = vld [vmem:[#allocation2 + $0x30] sm:$0xff]   ;;  %v1523_v28 = vld [vmem:[#allocation2 + $0x38] sm:$0xff]  }
  0x54   :  { %1108 = vmatpush3.bf16.msra.mxu0 %v1477_v2  ;;  %1027 = vmatprep.subr.bf16.mxu1 %v1197_v12  ;;  %v1206_v29 = vld [vmem:[#allocation7 + $0x30] sm:$0xff]   ;;  %v1207_v30 = vld [vmem:[#allocation7 + $0x78] sm:$0xff]   ;;  %v1209_v32 = vld [vmem:[#allocation8] ss:$8 sps:$4 sm:$0xff]  }
  0x55   :  { %1109 = vmatprep.subr.bf16.mxu0 %v1480_v3  ;;  %v1208_v31 = vld [vmem:[#allocation7 + $0x38] sm:$0xff]   ;;  %v1211_v33 = vld [vmem:[#allocation8 + $0x4] ss:$8 sps:$4 sm:$0xff]   ;;  %v1215_v37 = vld [vmem:[#allocation8 + $0x20] ss:$8 sps:$4 sm:$0xff]  }
  0x56   :  { %v1214_v34 = vld [vmem:[#allocation8 + $0x14] ss:$8 sps:$4 sm:$0xff]   ;;  %v1212_v35 = vld [vmem:[#allocation8 + $0x10] ss:$8 sps:$4 sm:$0xff]   ;;  %v1217_v36 = vld [vmem:[#allocation8 + $0x24] ss:$8 sps:$4 sm:$0xff]  }
  0x57   :  { %1028 = vmatpush3.bf16.msra.mxu1 %v1198_v14  ;;  %v1220_v38 = vld [vmem:[#allocation8 + $0x34] ss:$8 sps:$4 sm:$0xff]   ;;  %v1218_v39 = vld [vmem:[#allocation8 + $0x30] ss:$8 sps:$4 sm:$0xff]   ;;  %v1223_v40 = vld [vmem:[#allocation8 + $0x44] ss:$8 sps:$4 sm:$0xff]  }
  0x58   :  { %1110 = vmatpush3.bf16.msra.mxu0 %v1480_v3  ;;  %1029 = vmatprep.subr.bf16.mxu1 %v1199_v15  ;;  %v1221_v41 = vld [vmem:[#allocation8 + $0x40] ss:$8 sps:$4 sm:$0xff]   ;;  %v1229_v8 = vld [vmem:[#allocation8 + $0x64] ss:$8 sps:$4 sm:$0xff]   ;;  %v1230_v10 = vld [vmem:[#allocation8 + $0x70] ss:$8 sps:$4 sm:$0xff]  }
  0x59   :  { %1111 = vmatprep.subr.bf16.mxu0 %v1488_v5 }
  0x5b   :  { %1030 = vmatpush3.bf16.msra.mxu1 %v1200_v16 }
  0x5c   :  { %1112 = vmatpush3.bf16.msra.mxu0 %v1488_v5  ;;  %1031 = vmatprep.subr.bf16.mxu1 %v1201_v18 }
  0x5d   :  { %1113 = vmatprep.subr.bf16.mxu0 %v1491_v6 }
  0x5f   :  { %1032 = vmatpush3.bf16.msra.mxu1 %v1202_v20 }
  0x60   :  { %1114 = vmatpush3.bf16.msra.mxu0 %v1491_v6  ;;  %1033 = vmatprep.subr.bf16.mxu1 %v1203_v21 }
  0x61   :  { %1115 = vmatprep.subr.bf16.mxu0 %v1494_v9 }
  0x63   :  { %1034 = vmatpush3.bf16.msra.mxu1 %v1204_v22 }
  0x64   :  { %1116 = vmatpush3.bf16.msra.mxu0 %v1494_v9  ;;  %1035 = vmatprep.subr.bf16.mxu1 %v1205_v23 }
  0x65   :  { %1117 = vmatprep.subr.bf16.mxu0 %v1498_v13 }
  0x67   :  { %1036 = vmatpush3.bf16.msra.mxu1 %v1206_v29 }
  0x68   :  { %1118 = vmatpush3.bf16.msra.mxu0 %v1498_v13  ;;  %1037 = vmatprep.subr.bf16.mxu1 %v1207_v30 }
  0x69   :  { %665 = vmatprep.subr.bf16.mxu0 %v1211_v33 }
  0x6b   :  { %1120 = vmatmul.mubr.bf16.vlgmr.msra.gmra.mrb[0].mxu0 %v1504_v17  ;;  %1038 = vmatpush3.bf16.msra.mxu1 %v1208_v31 }
  0x6c   :  { %1123 = vmatprep.mubr.bf16.mxu0 %v1506_v19  ;;  %666 = vmatpush1.bf16.msra.mxu0 %v1209_v32 }
  0x6d   :  { %667 = vmatprep.subr.bf16.mxu0 %v1214_v34 }
  0x70   :  { %668 = vmatpush1.bf16.msra.mxu0 %v1212_v35 }
  0x71   :  { %669 = vmatprep.subr.bf16.mxu0 %v1217_v36 }
  0x73   :  { %1124 = vmatmul.mubr.bf16.gmra.mrb[4].mxu0 %v1511_v24 }
  0x74   :  { %1127 = vmatprep.mubr.bf16.mxu0 %v1513_v25  ;;  %670 = vmatpush1.bf16.msra.mxu0 %v1215_v37 }
  0x75   :  { %671 = vmatprep.subr.bf16.mxu0 %v1220_v38 }
  0x78   :  { %672 = vmatpush1.bf16.msra.mxu0 %v1218_v39 }
  0x79   :  { %673 = vmatprep.subr.bf16.mxu0 %v1223_v40 }
  0x7b   :  { %1128 = vmatmul.mubr.bf16.gmra.mrb[8].mxu0 %v1517_v26 }
  0x7c   :  { %1131 = vmatprep.mubr.bf16.mxu0 %v1519_v27  ;;  %674 = vmatpush1.bf16.msra.mxu0 %v1221_v41 }
  0x83   :  { %1132 = vmatmul.mubr.bf16.gmra.mrb[12].mxu0 %v1523_v28 }
 0x13e   :  { %v1121_v42 = vpop.f32.mrb[0].mxu0 }
 0x13f   :  { %v242_v43 = vpop.f32.mrb[1].mxu0 }
 0x140   :  { %v1122_v44 = vpop.f32.mrb[2].mxu0 }
 0x141   :  { %v306_v45 = vpack.c.bf16 %v1122_v44, %v1121_v42  ;;  %v245_v46 = vpop.f32.mrb[3].mxu0 }
 0x142   :  { %v305_v47 = vpack.c.bf16 %v245_v46, %v242_v43 }
 0x144   :  { %480 = vmatprep.mubr.bf16.mxu1 %v305_v47 }
 0x145   :  { %481 = vmatmul.mubr.bf16.vlgmr.msra.gmra.mrb[0].mxu1 %v1470_v0 }
 0x146   :  { %488 = vmatprep.mubr.bf16.mxu1 %v306_v45  ;;  %v1125_v48 = vpop.f32.mrb[4].mxu0 }
 0x147   :  { %v258_v49 = vpop.f32.mrb[5].mxu0 }
 0x148   :  { %v1126_v50 = vpop.f32.mrb[6].mxu0 }
 0x149   :  { %v308_v51 = vpack.c.bf16 %v1126_v50, %v1125_v48  ;;  %v261_v52 = vpop.f32.mrb[7].mxu0 }
 0x14a   :  { %v307_v53 = vpack.c.bf16 %v261_v52, %v258_v49 }
 0x14d   :  { %489 = vmatmul.mubr.bf16.gmra.mrb[4].mxu1 %v1472_v1  ;;  %v1226_v1 = vld [vmem:[#allocation8 + $0x54] ss:$8 sps:$4 sm:$0xff]  }
 0x14e   :  { %496 = vmatprep.mubr.bf16.mxu1 %v307_v53  ;;  %v1129_v54 = vpop.f32.mrb[8].mxu0  ;;  %675 = vmatprep.subr.bf16.mxu0 %v1226_v1 }
 0x14f   :  { %v274_v55 = vpop.f32.mrb[9].mxu0 }
 0x150   :  { %v1130_v56 = vpop.f32.mrb[10].mxu0 }
 0x151   :  { %v310_v57 = vpack.c.bf16 %v1130_v56, %v1129_v54  ;;  %v277_v58 = vpop.f32.mrb[11].mxu0 }
 0x152   :  { %v309_v59 = vpack.c.bf16 %v277_v58, %v274_v55 }
 0x155   :  { %497 = vmatmul.mubr.bf16.gmra.mrb[8].mxu1 %v1477_v2  ;;  %v1224_v2 = vld [vmem:[#allocation8 + $0x50] ss:$8 sps:$4 sm:$0xff]  }
 0x156   :  { %504 = vmatprep.mubr.bf16.mxu1 %v308_v51  ;;  %v1133_v60 = vpop.f32.mrb[12].mxu0  ;;  %676 = vmatpush1.bf16.msra.mxu0 %v1224_v2 }
 0x157   :  { %v290_v61 = vpop.f32.mrb[13].mxu0  ;;  %677 = vmatprep.subr.bf16.mxu0 %v1229_v8 }
 0x158   :  { %v1134_v62 = vpop.f32.mrb[14].mxu0 }
 0x159   :  { %v312_v63 = vpack.c.bf16 %v1134_v62, %v1133_v60  ;;  %v293_v0 = vpop.f32.mrb[15].mxu0 }
 0x15a   :  { %v311_v7 = vpack.c.bf16 %v293_v0, %v290_v61 }
 0x15d   :  { %505 = vmatmul.mubr.bf16.gmra.mrb[12].mxu1 %v1480_v3  ;;  %v1227_v3 = vld [vmem:[#allocation8 + $0x60] ss:$8 sps:$4 sm:$0xff]  }
 0x15e   :  { %512 = vmatprep.mubr.bf16.mxu1 %v309_v59  ;;  %678 = vmatpush1.bf16.msra.mxu0 %v1227_v3 }
 0x165   :  { %513 = vmatmul.mubr.bf16.gmra.mrb[16].mxu1 %v1488_v5  ;;  %v1232_v5 = vld [vmem:[#allocation8 + $0x74] ss:$8 sps:$4 sm:$0xff]  }
 0x166   :  { %520 = vmatprep.mubr.bf16.mxu1 %v310_v57  ;;  %679 = vmatprep.subr.bf16.mxu0 %v1232_v5 }
 0x167   :  { %680 = vmatpush1.bf16.msra.mxu0 %v1230_v10 }
 0x16d   :  { %521 = vmatmul.mubr.bf16.gmra.mrb[20].mxu1 %v1491_v6  ;;  %v1359_v6 = vmov 0  }
 0x16e   :  { %528 = vmatprep.mubr.bf16.mxu1 %v311_v7  ;;  %697 = vmatprep.mubr.bf16.mxu0 %v1359_v6 }
 0x175   :  { %529 = vmatmul.mubr.bf16.gmra.mrb[24].mxu1 %v1494_v9 }
 0x176   :  { %536 = vmatprep.mubr.bf16.mxu1 %v312_v63 }
 0x17d   :  { %537 = vmatmul.mubr.bf16.gmra.mrb[28].mxu1 %v1498_v13 }
 0x17e   :  { %1151 = vmatprep.mubr.bf16.mxu1 %v1483_v4  ;;  %v1539_v4 = vld [vmem:[%s1646_s3] ss:$0 sm:$0xff] }
 0x218   :  { %v1039_v9 = vpop.f32.mrb[0].mxu1 }
 0x219   :  { %v1040_v11 = vpop.f32.mrb[1].mxu1 }
 0x21a   :  { %v1041_v12 = vadd.f32 %v1040_v11, %v1039_v9  ;;  %v1042_v13 = vpop.f32.mrb[2].mxu1 }
 0x21b   :  { %v1043_v14 = vpop.f32.mrb[3].mxu1 }
 0x21c   :  { %v483_v15 = vadd.f32 %v1041_v12, %v1539_v4  ;;  %v1044_v16 = vadd.f32 %v1043_v14, %v1042_v13 }
 0x21e   :  { %v486_v18 = vadd.f32 %v1044_v16, %v1539_v4  ;;  %v545_v20 = vmax.f32 %v483_v15, 0.0 }
 0x220   :  { %v546_v21 = vmax.f32 %v486_v18, 0.0  ;;  %v1045_v22 = vpop.f32.mrb[4].mxu1 }
 0x221   :  { %v1046_v23 = vpop.f32.mrb[5].mxu1 }
 0x222   :  { %v561_v29 = vpack.c.bf16 %v546_v21, %v545_v20  ;;  %v1047_v30 = vadd.f32 %v1046_v23, %v1045_v22  ;;  %v1048_v31 = vpop.f32.mrb[6].mxu1 }
 0x223   :  { %v1049_v32 = vpop.f32.mrb[7].mxu1 }
 0x224   :  { %v491_v33 = vadd.f32 %v1047_v30, %v1539_v4  ;;  %v1050_v34 = vadd.f32 %v1049_v32, %v1048_v31  ;;  %698 = vmatmul.mubr.bf16.vlgmr.msra.gmra.mrb[16].mxu0 %v561_v29 }
 0x225   :  { %707 = vmatprep.mubr.bf16.mxu0 %v1359_v6 }
 0x226   :  { %v494_v35 = vadd.f32 %v1050_v34, %v1539_v4  ;;  %v547_v36 = vmax.f32 %v491_v33, 0.0 }
 0x228   :  { %v548_v37 = vmax.f32 %v494_v35, 0.0  ;;  %v1051_v38 = vpop.f32.mrb[8].mxu1 }
 0x229   :  { %v1052_v39 = vpop.f32.mrb[9].mxu1 }
 0x22a   :  { %v1053_v40 = vadd.f32 %v1052_v39, %v1051_v38  ;;  %v1054_v41 = vpop.f32.mrb[10].mxu1  ;;  %v562_v42 = vpack.c.bf16 %v548_v37, %v547_v36 }
 0x22b   :  { %v1055_v43 = vpop.f32.mrb[11].mxu1 }
 0x22c   :  { %v499_v44 = vadd.f32 %v1053_v40, %v1539_v4  ;;  %v1056_v45 = vadd.f32 %v1055_v43, %v1054_v41  ;;  %708 = vmatmul.mubr.bf16.gmra.mrb[20].mxu0 %v562_v42 }
 0x22d   :  { %717 = vmatprep.mubr.bf16.mxu0 %v1359_v6 }
 0x22e   :  { %v502_v46 = vadd.f32 %v1056_v45, %v1539_v4  ;;  %v549_v47 = vmax.f32 %v499_v44, 0.0 }
 0x230   :  { %v550_v48 = vmax.f32 %v502_v46, 0.0  ;;  %v1057_v49 = vpop.f32.mrb[12].mxu1 }
 0x231   :  { %v1058_v50 = vpop.f32.mrb[13].mxu1 }
 0x232   :  { %v1059_v51 = vadd.f32 %v1058_v50, %v1057_v49  ;;  %v1060_v52 = vpop.f32.mrb[14].mxu1  ;;  %v563_v53 = vpack.c.bf16 %v550_v48, %v549_v47 }
 0x233   :  { %v1061_v54 = vpop.f32.mrb[15].mxu1 }
 0x234   :  { %v507_v55 = vadd.f32 %v1059_v51, %v1539_v4  ;;  %v1062_v56 = vadd.f32 %v1061_v54, %v1060_v52  ;;  %718 = vmatmul.mubr.bf16.gmra.mrb[24].mxu0 %v563_v53 }
 0x235   :  { %727 = vmatprep.mubr.bf16.mxu0 %v1359_v6 }
 0x236   :  { %v510_v57 = vadd.f32 %v1062_v56, %v1539_v4  ;;  %v551_v58 = vmax.f32 %v507_v55, 0.0 }
 0x238   :  { %v552_v59 = vmax.f32 %v510_v57, 0.0  ;;  %v1063_v60 = vpop.f32.mrb[16].mxu1 }
 0x239   :  { %v1064_v61 = vpop.f32.mrb[17].mxu1 }
 0x23a   :  { %v1065_v62 = vadd.f32 %v1064_v61, %v1063_v60  ;;  %v1066_v63 = vpop.f32.mrb[18].mxu1  ;;  %v564_v0 = vpack.c.bf16 %v552_v59, %v551_v58 }
 0x23b   :  { %v1067_v7 = vpop.f32.mrb[19].mxu1 }
 0x23c   :  { %v515_v1 = vadd.f32 %v1065_v62, %v1539_v4  ;;  %v1068_v2 = vadd.f32 %v1067_v7, %v1066_v63  ;;  %728 = vmatmul.mubr.bf16.gmra.mrb[28].mxu0 %v564_v0 }
 0x23d   :  { %737 = vmatprep.mubr.bf16.mxu0 %v1359_v6 }
 0x23e   :  { %v518_v8 = vadd.f32 %v1068_v2, %v1539_v4  ;;  %v553_v3 = vmax.f32 %v515_v1, 0.0 }
 0x240   :  { %v554_v5 = vmax.f32 %v518_v8, 0.0  ;;  %v1069_v10 = vpop.f32.mrb[20].mxu1 }
 0x241   :  { %v1070_v9 = vpop.f32.mrb[21].mxu1 }
 0x242   :  { %v1071_v11 = vadd.f32 %v1070_v9, %v1069_v10  ;;  %v1072_v12 = vpop.f32.mrb[22].mxu1  ;;  %v565_v13 = vpack.c.bf16 %v554_v5, %v553_v3 }
 0x243   :  { %v1073_v14 = vpop.f32.mrb[23].mxu1 }
 0x244   :  { %v523_v15 = vadd.f32 %v1071_v11, %v1539_v4  ;;  %v1074_v16 = vadd.f32 %v1073_v14, %v1072_v12  ;;  %738 = vmatmul.mubr.bf16.gmra.mrb[32].mxu0 %v565_v13 }
 0x245   :  { %747 = vmatprep.mubr.bf16.mxu0 %v1359_v6 }
 0x246   :  { %v526_v18 = vadd.f32 %v1074_v16, %v1539_v4  ;;  %v555_v20 = vmax.f32 %v523_v15, 0.0 }
 0x248   :  { %v556_v21 = vmax.f32 %v526_v18, 0.0  ;;  %v1075_v22 = vpop.f32.mrb[24].mxu1 }
 0x249   :  { %v1076_v23 = vpop.f32.mrb[25].mxu1 }
 0x24a   :  { %v1077_v29 = vadd.f32 %v1076_v23, %v1075_v22  ;;  %v1078_v30 = vpop.f32.mrb[26].mxu1  ;;  %v566_v31 = vpack.c.bf16 %v556_v21, %v555_v20 }
 0x24b   :  { %v1079_v32 = vpop.f32.mrb[27].mxu1 }
 0x24c   :  { %v531_v33 = vadd.f32 %v1077_v29, %v1539_v4  ;;  %v1080_v34 = vadd.f32 %v1079_v32, %v1078_v30  ;;  %748 = vmatmul.mubr.bf16.gmra.mrb[36].mxu0 %v566_v31 }
 0x24d   :  { %757 = vmatprep.mubr.bf16.mxu0 %v1359_v6 }
 0x24e   :  { %v534_v35 = vadd.f32 %v1080_v34, %v1539_v4  ;;  %v557_v36 = vmax.f32 %v531_v33, 0.0  ;;  %v1598_v34 = vld [vmem:[%s1648_s5] ss:$0 sm:$0xff]  ;;  %s1360_s5 = smov [#allocation10]  }
 0x24f   :  { %s943_s23 = sshll.u32 %s1360_s5, 4  ;;  %s944_s23 = int_to_ptr.vmem [resolvable:$true] %s943_s23 }
 0x250   :  { %v558_v37 = vmax.f32 %v534_v35, 0.0  ;;  %v1081_v38 = vpop.f32.mrb[28].mxu1  ;;  %s1321_s25 = scalar_lea.vmem %s944_s23, 2048  ;;  %p1326_p5 = scmp.lt.s32.totalorder %s944_s23, %s944_s23 }
 0x251   :  { %v1082_v39 = vpop.f32.mrb[29].mxu1  ;;  %p1322_p4 = scmp.ne.s32.totalorder %s944_s23, %s1321_s25  ;;  %p1327_p6 = scmp.lt.s32.totalorder %s1321_s25, %s1321_s25 }
 0x252   :  { %v1083_v40 = vadd.f32 %v1082_v39, %v1081_v38  ;;  %v1084_v41 = vpop.f32.mrb[30].mxu1  ;;  %v567_v42 = vpack.c.bf16 %v558_v37, %v557_v36 }
 0x253   :  { %v1085_v43 = vpop.f32.mrb[31].mxu1  ;;  %p1328_p7 = por %p1327_p6, %p1326_p5 }
 0x254   :  { %v539_v44 = vadd.f32 %v1083_v40, %v1539_v4  ;;  %v1086_v45 = vadd.f32 %v1085_v43, %v1084_v41  ;;  %758 = vmatmul.mubr.bf16.gmra.mrb[40].mxu0 %v567_v42 }
 0x255   :  { %767 = vmatprep.mubr.bf16.mxu0 %v1359_v6  ;;  %p1329_p8 = pnand %p1328_p7, %p1322_p4 }
 0x256   :  { %v542_v46 = vadd.f32 %v1086_v45, %v1539_v4  ;;  %v559_v47 = vmax.f32 %v539_v44, 0.0 }
 0x258   :  { %v560_v48 = vmax.f32 %v542_v46, 0.0 }
 0x25a   :  { %v568_v49 = vpack.c.bf16 %v560_v48, %v559_v47 }
 0x25c   :  { %768 = vmatmul.mubr.bf16.gmra.mrb[44].mxu0 %v568_v49 }
 0x2f7   :  { %v1564_v50 = vpop.f32.mrb[16].mxu0 }
 0x2f8   :  { %v701_v51 = vpop.f32.mrb[17].mxu0 }
 0x2f9   :  { %v1566_v52 = vpop.f32.mrb[18].mxu0 }
 0x2fa   :  { %v705_v53 = vpop.f32.mrb[19].mxu0 }
 0x2fb   :  { %v778_v54 = vpack.c.bf16 %v705_v53, %v701_v51 }
 0x2fd   :  { %1135 = vmatprep.subr.bf16.mxu1 %v778_v54 }
 0x2fe   :  { %1136 = vmatpush3.bf16.msra.mxu1 %v778_v54 }
 0x2ff   :  { %v709_v55 = vpop.f32.mrb[20].mxu0 }
 0x300   :  { %v711_v56 = vpop.f32.mrb[21].mxu0 }
 0x301   :  { %v713_v57 = vpop.f32.mrb[22].mxu0 }
 0x302   :  { %v715_v58 = vpop.f32.mrb[23].mxu0 }
 0x303   :  { %v779_v6 = vpack.c.bf16 %v715_v58, %v711_v56 }
 0x305   :  { %1137 = vmatprep.subr.bf16.mxu1 %v779_v6 }
 0x306   :  { %1138 = vmatpush3.bf16.msra.mxu1 %v779_v6 }
 0x307   :  { %v1568_v4 = vpop.f32.mrb[24].mxu0 }
 0x308   :  { %v721_v59 = vpop.f32.mrb[25].mxu0 }
 0x309   :  { %v1570_v60 = vpop.f32.mrb[26].mxu0 }
 0x30a   :  { %v725_v61 = vpop.f32.mrb[27].mxu0 }
 0x30b   :  { %v780_v62 = vpack.c.bf16 %v725_v61, %v721_v59 }
 0x30d   :  { %1139 = vmatprep.subr.bf16.mxu1 %v780_v62 }
 0x30e   :  { %1140 = vmatpush3.bf16.msra.mxu1 %v780_v62 }
 0x30f   :  { %v729_v63 = vpop.f32.mrb[28].mxu0 }
 0x310   :  { %v731_v0 = vpop.f32.mrb[29].mxu0 }
 0x311   :  { %v1572_v7 = vpop.f32.mrb[30].mxu0 }
 0x312   :  { %v735_v1 = vpop.f32.mrb[31].mxu0 }
 0x313   :  { %v781_v2 = vpack.c.bf16 %v735_v1, %v731_v0 }
 0x315   :  { %1141 = vmatprep.subr.bf16.mxu1 %v781_v2 }
 0x316   :  { %1142 = vmatpush3.bf16.msra.mxu1 %v781_v2 }
 0x317   :  { %v1574_v8 = vpop.f32.mrb[32].mxu0 }
 0x318   :  { %v741_v3 = vpop.f32.mrb[33].mxu0 }
 0x319   :  { %v1576_v5 = vpop.f32.mrb[34].mxu0 }
 0x31a   :  { %v745_v10 = vpop.f32.mrb[35].mxu0 }
 0x31b   :  { %v782_v9 = vpack.c.bf16 %v745_v10, %v741_v3 }
 0x31d   :  { %1143 = vmatprep.subr.bf16.mxu1 %v782_v9 }
 0x31e   :  { %1144 = vmatpush3.bf16.msra.mxu1 %v782_v9 }
 0x31f   :  { %v749_v11 = vpop.f32.mrb[36].mxu0 }
 0x320   :  { %v751_v12 = vpop.f32.mrb[37].mxu0 }
 0x321   :  { %v1578_v13 = vpop.f32.mrb[38].mxu0 }
 0x322   :  { %v755_v14 = vpop.f32.mrb[39].mxu0 }
 0x323   :  { %v783_v15 = vpack.c.bf16 %v755_v14, %v751_v12 }
 0x325   :  { %1145 = vmatprep.subr.bf16.mxu1 %v783_v15 }
 0x326   :  { %1146 = vmatpush3.bf16.msra.mxu1 %v783_v15 }
 0x327   :  { %v1580_v16 = vpop.f32.mrb[40].mxu0 }
 0x328   :  { %v761_v18 = vpop.f32.mrb[41].mxu0 }
 0x329   :  { %v1582_v20 = vpop.f32.mrb[42].mxu0 }
 0x32a   :  { %v765_v21 = vpop.f32.mrb[43].mxu0 }
 0x32b   :  { %v784_v22 = vpack.c.bf16 %v765_v21, %v761_v18 }
 0x32d   :  { %1147 = vmatprep.subr.bf16.mxu1 %v784_v22 }
 0x32e   :  { %1148 = vmatpush3.bf16.msra.mxu1 %v784_v22 }
 0x32f   :  { %v1584_v23 = vpop.f32.mrb[44].mxu0 }
 0x330   :  { %v771_v29 = vpop.f32.mrb[45].mxu0 }
 0x331   :  { %v1586_v30 = vpop.f32.mrb[46].mxu0 }
 0x332   :  { %v775_v31 = vpop.f32.mrb[47].mxu0 }
 0x333   :  { %v785_v32 = vpack.c.bf16 %v775_v31, %v771_v29 }
 0x335   :  { %1149 = vmatprep.subr.bf16.mxu1 %v785_v32 }
 0x336   :  { %1150 = vmatpush3.bf16.msra.mxu1 %v785_v32 }
 0x339   :  { %1152 = vmatmul.mubr.bf16.vlgmr.msra.gmra.mrb[32].mxu1 %v1504_v17 }
 0x33a   :  { %1155 = vmatprep.mubr.bf16.mxu1 %v1506_v19 }
 0x341   :  { %1156 = vmatmul.mubr.bf16.gmra.mrb[36].mxu1 %v1511_v24 }
 0x342   :  { %1159 = vmatprep.mubr.bf16.mxu1 %v1513_v25 }
 0x349   :  { %1160 = vmatmul.mubr.bf16.gmra.mrb[40].mxu1 %v1517_v26 }
 0x34a   :  { %1163 = vmatprep.mubr.bf16.mxu1 %v1519_v27 }
 0x351   :  { %1164 = vmatmul.mubr.bf16.gmra.mrb[44].mxu1 %v1523_v28 }
 0x40c   :  { %v1153_v33 = vpop.f32.mrb[32].mxu1 }
 0x40d   :  { %v885_v35 = vadd.f32 %v1153_v33, %v709_v55  ;;  %v820_v17 = vpop.f32.mrb[33].mxu1 }
 0x40e   :  { %v883_v19 = vadd.f32 %v820_v17, %v1564_v50  ;;  %v1154_v36 = vpop.f32.mrb[34].mxu1 }
 0x40f   :  { %v908_v24 = vadd.f32 %v1598_v34, %v885_v35  ;;  %v886_v25 = vadd.f32 %v1154_v36, %v713_v57  ;;  %v823_v37 = vpop.f32.mrb[35].mxu1 }
 0x410   :  { %v906_v26 = vadd.f32 %v1598_v34, %v883_v19  ;;  %v884_v27 = vadd.f32 %v823_v37, %v1566_v52 }
 0x411   :  { %924 = vst [vmem:[#allocation10 + $0x10] sm:$0xff] %v908_v24  ;;  %v909_v28 = vadd.f32 %v1598_v34, %v886_v25 }
 0x412   :  { %922 = vst [vmem:[#allocation10] sm:$0xff] %v906_v26  ;;  %v907_v38 = vadd.f32 %v1598_v34, %v884_v27 }
 0x413   :  { %925 = vst [vmem:[#allocation10 + $0x18] sm:$0xff] %v909_v28 }
 0x414   :  { %923 = vst [vmem:[#allocation10 + $0x8] sm:$0xff] %v907_v38  ;;  %v1157_v39 = vpop.f32.mrb[36].mxu1 }
 0x415   :  { %v889_v40 = vadd.f32 %v1157_v39, %v729_v63  ;;  %v836_v41 = vpop.f32.mrb[37].mxu1 }
 0x416   :  { %v887_v42 = vadd.f32 %v836_v41, %v1568_v4  ;;  %v1158_v43 = vpop.f32.mrb[38].mxu1 }
 0x417   :  { %v912_v44 = vadd.f32 %v1598_v34, %v889_v40  ;;  %v890_v45 = vadd.f32 %v1158_v43, %v1572_v7  ;;  %v839_v46 = vpop.f32.mrb[39].mxu1 }
 0x418   :  { %v910_v47 = vadd.f32 %v1598_v34, %v887_v42  ;;  %v888_v48 = vadd.f32 %v839_v46, %v1570_v60 }
 0x419   :  { %928 = vst [vmem:[#allocation10 + $0x30] sm:$0xff] %v912_v44  ;;  %v913_v49 = vadd.f32 %v1598_v34, %v890_v45 }
 0x41a   :  { %926 = vst [vmem:[#allocation10 + $0x20] sm:$0xff] %v910_v47  ;;  %v911_v50 = vadd.f32 %v1598_v34, %v888_v48 }
 0x41b   :  { %929 = vst [vmem:[#allocation10 + $0x38] sm:$0xff] %v913_v49 }
 0x41c   :  { %927 = vst [vmem:[#allocation10 + $0x28] sm:$0xff] %v911_v50  ;;  %v1161_v51 = vpop.f32.mrb[40].mxu1 }
 0x41d   :  { %v893_v52 = vadd.f32 %v1161_v51, %v749_v11  ;;  %v852_v53 = vpop.f32.mrb[41].mxu1 }
 0x41e   :  { %v891_v54 = vadd.f32 %v852_v53, %v1574_v8  ;;  %v1162_v55 = vpop.f32.mrb[42].mxu1 }
 0x41f   :  { %v916_v56 = vadd.f32 %v1598_v34, %v893_v52  ;;  %v894_v57 = vadd.f32 %v1162_v55, %v1578_v13  ;;  %v855_v58 = vpop.f32.mrb[43].mxu1 }
 0x420   :  { %v914_v6 = vadd.f32 %v1598_v34, %v891_v54  ;;  %v892_v4 = vadd.f32 %v855_v58, %v1576_v5 }
 0x421   :  { %932 = vst [vmem:[#allocation10 + $0x50] sm:$0xff] %v916_v56  ;;  %v917_v59 = vadd.f32 %v1598_v34, %v894_v57 }
 0x422   :  { %930 = vst [vmem:[#allocation10 + $0x40] sm:$0xff] %v914_v6  ;;  %v915_v60 = vadd.f32 %v1598_v34, %v892_v4 }
 0x423   :  { %933 = vst [vmem:[#allocation10 + $0x58] sm:$0xff] %v917_v59 }
 0x424   :  { %931 = vst [vmem:[#allocation10 + $0x48] sm:$0xff] %v915_v60  ;;  %v1165_v61 = vpop.f32.mrb[44].mxu1 }
 0x425   :  { %v897_v62 = vadd.f32 %v1165_v61, %v1584_v23  ;;  %v868_v63 = vpop.f32.mrb[45].mxu1 }
 0x426   :  { %v895_v0 = vadd.f32 %v868_v63, %v1580_v16  ;;  %v1166_v7 = vpop.f32.mrb[46].mxu1 }
 0x427   :  { %v920_v1 = vadd.f32 %v1598_v34, %v897_v62  ;;  %v898_v2 = vadd.f32 %v1166_v7, %v1586_v30  ;;  %v871_v8 = vpop.f32.mrb[47].mxu1 }
 0x428   :  { %v918_v3 = vadd.f32 %v1598_v34, %v895_v0  ;;  %v896_v5 = vadd.f32 %v871_v8, %v1582_v20 }
 0x429   :  { %936 = vst [vmem:[#allocation10 + $0x70] sm:$0xff] %v920_v1  ;;  %v921_v10 = vadd.f32 %v1598_v34, %v898_v2 }
 0x42a   :  { %934 = vst [vmem:[#allocation10 + $0x60] sm:$0xff] %v918_v3  ;;  %v919_v9 = vadd.f32 %v1598_v34, %v896_v5 }
 0x42b   :  { %937 = vst [vmem:[#allocation10 + $0x78] sm:$0xff] %v921_v10 }
 0x42c   :  { %935 = vst [vmem:[#allocation10 + $0x68] sm:$0xff] %v919_v9 }
 0x42d   :  { %1332 = shalt.err (!%p1329_p8)
}
 0x42e   :  { %s1333_s28 = scalar_lea.hbm %s1649_s6, 2048 }
 0x42f   :  { %p1334_p9 = scmp.ne.s32.totalorder %s1649_s6, %s1333_s28  ;;  %p1337_p10 = scmp.lt.u32.totalorder %s1333_s28, %s1649_s6 }
 0x431   :  { %p1339_p11 = pnand %p1337_p10, %p1334_p9 }
 0x433   :  { %1342 = shalt.err (!%p1339_p11)
}
 0x434   :  { %949 = dma.vmem_to_hbm [thread:$0]  %s944_s23, 2048, %s1649_s6, [#allocation4], %s1357_s2, %s1357_s2, %s1358_s9  }
 0x435   :  { %1349 = dma.done.wait [#allocation4], 2048  }
 0x436   :  { %1350 = vsyncadd [#allocation4], 4294965248 }
 0x437   :  { %953 = vsyncpa [#allocation3], 1 }
 0x438   :  { %954 = vsyncpa [#allocation6], 1 }
 0x439   :  { %955 = vsyncpa [#allocation9], 1 }
 0x43a   :  { %956 = vsyncpa [#allocation4], 1 }

</bundles_post_ra>
